<compile_context>
chip_gen: v5e
topology: v5e:2x2
jax: 0.10.0
libtpu: 0.0.40
codegen_flags: <defaults>
</compile_context>

<pallas_src>
import functools

import jax
import jax.numpy as jnp
from jax.experimental import pallas as pl
from jax.experimental.pallas import tpu as pltpu

LANE = 128
SUBLANE = 8


def _round_up(n, m):
    return ((n + m - 1) // m) * m


# ---------------------------------------------------------------------------
# Fused kernel: relu(x @ W_i + b_i) for hidden layers, plain matmul for the
# predict layer.  All layers live in one weight slab (layer i occupies rows
# [i*d_pad, (i+1)*d_pad)) and one f32 bias slab (row i).  Slices are static
# and sublane/lane aligned -> free views, no VMEM copies.
# ---------------------------------------------------------------------------
def _make_fused_dnn_kernel(n_layers, d_pad):
    def kernel(x_ref, w_ref, b_ref, o_ref):
        h = x_ref[...]
        for i in range(n_layers):
            w = w_ref[i * d_pad:(i + 1) * d_pad, :]        # (d_pad, d_pad)
            b = b_ref[i:i + 1, :]                           # (1, d_pad), f32
            # MXU matmul in the slab dtype (f32 or bf16), f32 accumulation.
            z = jnp.dot(h.astype(w.dtype), w,
                        preferred_element_type=jnp.float32) + b
            # Bias add + ReLU stay in f32 (cheap VPU path on all gens).
            h = jnp.maximum(z, 0.0) if i < n_layers - 1 else z
        o_ref[...] = h.astype(o_ref.dtype)
    return kernel


# ---------------------------------------------------------------------------
# Parameter construction (matches DNN.__init__ deterministically)
# ---------------------------------------------------------------------------
def init_dnn_params(key, n_feature, n_hidden, n_output):
    """fc weights ~ N(0, 0.1), biases = -0.0 ; BN: gamma=1, beta=0,
    running_mean=0, running_var=1 (PyTorch defaults).  PyTorch Linear weight
    is (out, in); stored transposed here as (in, out)."""
    dims = [n_feature] + list(n_hidden)
    params = {"fcs": [], "bns": []}
    for i in range(1, len(dims)):
        key, wk = jax.random.split(key)
        d_in, d_out = dims[i - 1], dims[i]
        w = 0.1 * jax.random.normal(wk, (d_in, d_out), dtype=jnp.float32)
        b = jnp.full((d_out,), -0.0, dtype=jnp.float32)
        params["fcs"].append((w, b))
        params["bns"].append((
            jnp.ones((d_out,), jnp.float32),    # gamma (weight)
            jnp.zeros((d_out,), jnp.float32),   # beta  (bias)
            jnp.zeros((d_out,), jnp.float32),   # running_mean
            jnp.ones((d_out,), jnp.float32),    # running_var
        ))
    key, wk = jax.random.split(key)
    w_pred = 0.1 * jax.random.normal(wk, (dims[-1], n_output), dtype=jnp.float32)
    b_pred = jnp.full((n_output,), -0.0, dtype=jnp.float32)
    params["predict"] = (w_pred, b_pred)
    return params


# ---------------------------------------------------------------------------
# Fold eval-mode BN into the Linear weights (in f32), then pack every layer
# into one lane-padded contiguous weight slab + one f32 bias slab.
# ---------------------------------------------------------------------------
def pack_params(params, *, eps=1e-5, param_dtype=jnp.float32):
    layers = []
    for (w, b), (gamma, beta, mean, var) in zip(params["fcs"], params["bns"]):
        scale = gamma * jax.lax.rsqrt(var + eps)            # (H,), f32
        layers.append((w * scale[None, :], (b - mean) * scale + beta))
    layers.append(params["predict"])                        # no BN on predict

    dims = [layers[0][0].shape[0]] + [w.shape[1] for w, _ in layers]
    d_pad = _round_up(max(dims), LANE)
    n_layers = len(layers)
    n_output = layers[-1][0].shape[1]

    w_slab = jnp.zeros((n_layers * d_pad, d_pad), jnp.float32)
    b_slab = jnp.zeros((_round_up(n_layers, SUBLANE), d_pad), jnp.float32)
    for i, (w, b) in enumerate(layers):
        k, n = w.shape
        w_slab = w_slab.at[i * d_pad:i * d_pad + k, :n].set(w)
        b_slab = b_slab.at[i, :n].set(b)

    # Weights may be downcast (bf16 path for v6e/v7x MXU); biases stay f32.
    return w_slab.astype(param_dtype), b_slab, d_pad, n_layers, n_output


# ---------------------------------------------------------------------------
# Forward pass: single pallas_call, grid over batch only.  Weight/bias slabs
# use constant-index whole-array blocks so they stay VMEM-resident; x/out are
# streamed block_b rows at a time (auto double-buffered) and the batch axis is
# marked "parallel" (v7x dual-TC sharding).  At B=8 the grid is a single step.
# ---------------------------------------------------------------------------
@functools.partial(jax.jit,
                   static_argnames=("n_layers", "d_pad", "n_output", "block_b"))
def dnn_forward(x, w_slab, b_slab, *, n_layers, d_pad, n_output, block_b=256):
    B, F = x.shape
    compute_dtype = w_slab.dtype

    b_pad = _round_up(B, SUBLANE)
    block_b = min(block_b, b_pad)
    b_pad = _round_up(b_pad, block_b)                       # grid divides evenly

    xp = jnp.zeros((b_pad, d_pad), compute_dtype)
    xp = xp.at[:B, :F].set(x.astype(compute_dtype))

    out = pl.pallas_call(
        _make_fused_dnn_kernel(n_layers, d_pad),
        out_shape=jax.ShapeDtypeStruct((b_pad, d_pad), compute_dtype),
        grid=(b_pad // block_b,),
        in_specs=[
            pl.BlockSpec((block_b, d_pad), lambda i: (i, 0)),     # x rows
            pl.BlockSpec(w_slab.shape, lambda i: (0, 0)),         # weights, pinned
            pl.BlockSpec(b_slab.shape, lambda i: (0, 0)),         # biases, pinned
        ],
        out_specs=pl.BlockSpec((block_b, d_pad), lambda i: (i, 0)),
        compiler_params=pltpu.CompilerParams(
            dimension_semantics=("parallel",)),
    )(xp, w_slab, b_slab)
    return out[:B, :n_output]


# ---------------------------------------------------------------------------
if __name__ == "__main__":
    n_feature, n_hidden, n_output = 16, [32, 32], 4

    key = jax.random.PRNGKey(0)
    key, xk, pk = jax.random.split(key, 3)
    params = init_dnn_params(pk, n_feature, n_hidden, n_output)

    def reference(x):
        h = x
        for (w, b), (g, be, m, v) in zip(params["fcs"], params["bns"]):
            h = h @ w + b
            h = (h - m) / jnp.sqrt(v + 1e-5) * g + be
            h = jnp.maximum(h, 0.0)
        wp, bp = params["predict"]
        return h @ wp + bp

    # --- small-batch latency path (f32, grid collapses to one step) --------
    x_small = jax.random.normal(xk, (8, n_feature), dtype=jnp.float32)
    w_slab, b_slab, d_pad, n_layers, n_out = pack_params(params)
    out = dnn_forward(x_small, w_slab, b_slab,
                      n_layers=n_layers, d_pad=d_pad, n_output=n_out)
    jax.block_until_ready(out)
    ref = reference(x_small)
    assert out.shape == (8, n_output)
    assert jnp.allclose(out, ref, atol=1e-5, rtol=1e-5), \
        float(jnp.max(jnp.abs(out - ref)))

    # --- batched throughput path (f32, 4 grid steps, batch-parallel) -------
    key, xk2 = jax.random.split(key)
    x_big = jax.random.normal(xk2, (1024, n_feature), dtype=jnp.float32)
    out_big = dnn_forward(x_big, w_slab, b_slab,
                          n_layers=n_layers, d_pad=d_pad, n_output=n_out,
                          block_b=256)
    jax.block_until_ready(out_big)
    ref_big = reference(x_big)
    assert jnp.allclose(out_big, ref_big, atol=1e-5, rtol=1e-5), \
        float(jnp.max(jnp.abs(out_big - ref_big)))

    # --- bf16 MXU-input path (v6e/v7x): bf16 operands, f32 accumulate ------
    w16, b16, _, _, _ = pack_params(params, param_dtype=jnp.bfloat16)
    out16 = dnn_forward(x_big, w16, b16,
                        n_layers=n_layers, d_pad=d_pad, n_output=n_out,
                        block_b=256)
    jax.block_until_ready(out16)
    assert jnp.allclose(out16.astype(jnp.float32), ref_big,
                        atol=3e-2, rtol=3e-2), \
        float(jnp.max(jnp.abs(out16.astype(jnp.float32) - ref_big)))

    print("KERNEL_OK")
</pallas_src>

<mosaic_0001>
module attributes {stable_mosaic.version = 11 : i64} {
  func.func @kernel(%arg0: i32, %arg1: memref<8x128xf32, #tpu.memory_space<vmem>>, %arg2: memref<384x128xf32, #tpu.memory_space<vmem>>, %arg3: memref<8x128xf32, #tpu.memory_space<vmem>>, %arg4: memref<8x128xf32, #tpu.memory_space<vmem>>) attributes {dimension_semantics = [#tpu.dimension_semantics<parallel>], iteration_bounds = array<i64: 1>, scalar_prefetch = 0 : i64, scratch_operands = 0 : i64, tpu.core_type = #tpu.core_type<tc>, window_params = [{transform_indices = @transform_0, window_bounds = array<i64: 8, 128>}, {pipeline_mode = #tpu.pipeline_mode<synchronous>, transform_indices = @transform_1, window_bounds = array<i64: 384, 128>}, {pipeline_mode = #tpu.pipeline_mode<synchronous>, transform_indices = @transform_2, window_bounds = array<i64: 8, 128>}, {transform_indices = @transform_3, window_bounds = array<i64: 8, 128>}]} {
    %c0 = arith.constant 0 : index
    %c0_0 = arith.constant 0 : index
    %0 = vector.load %arg1[%c0, %c0_0] : memref<8x128xf32, #tpu.memory_space<vmem>>, vector<8x128xf32>
    %c0_1 = arith.constant 0 : index
    %c0_2 = arith.constant 0 : index
    %1 = vector.load %arg2[%c0_1, %c0_2] : memref<384x128xf32, #tpu.memory_space<vmem>>, vector<128x128xf32>
    %c0_3 = arith.constant 0 : index
    %c0_4 = arith.constant 0 : index
    %2 = vector.load %arg3[%c0_3, %c0_4] : memref<8x128xf32, #tpu.memory_space<vmem>>, vector<1x128xf32>
    %cst = arith.constant dense<0.000000e+00> : vector<8x128xf32>
    %3 = tpu.matmul %0, %1, %cst {dimension_numbers = #tpu.dot_dimension_numbers<[1], [0], [0], [1], [0, 0, 1, 1], [], []>} : vector<8x128xf32>, vector<128x128xf32>, vector<8x128xf32> -> vector<8x128xf32>
    %4 = vector.broadcast %2 : vector<1x128xf32> to vector<8x128xf32>
    %5 = arith.addf %3, %4 : vector<8x128xf32>
    %cst_5 = arith.constant 0.000000e+00 : f32
    %6 = vector.broadcast %cst_5 : f32 to vector<8x128xf32>
    %7 = arith.maximumf %5, %6 : vector<8x128xf32>
    %c128 = arith.constant 128 : index
    %c0_6 = arith.constant 0 : index
    %8 = vector.load %arg2[%c128, %c0_6] : memref<384x128xf32, #tpu.memory_space<vmem>>, vector<128x128xf32>
    %c1 = arith.constant 1 : index
    %c0_7 = arith.constant 0 : index
    %9 = vector.load %arg3[%c1, %c0_7] : memref<8x128xf32, #tpu.memory_space<vmem>>, vector<1x128xf32>
    %cst_8 = arith.constant dense<0.000000e+00> : vector<8x128xf32>
    %10 = tpu.matmul %7, %8, %cst_8 {dimension_numbers = #tpu.dot_dimension_numbers<[1], [0], [0], [1], [0, 0, 1, 1], [], []>} : vector<8x128xf32>, vector<128x128xf32>, vector<8x128xf32> -> vector<8x128xf32>
    %11 = vector.broadcast %9 : vector<1x128xf32> to vector<8x128xf32>
    %12 = arith.addf %10, %11 : vector<8x128xf32>
    %cst_9 = arith.constant 0.000000e+00 : f32
    %13 = vector.broadcast %cst_9 : f32 to vector<8x128xf32>
    %14 = arith.maximumf %12, %13 : vector<8x128xf32>
    %c256 = arith.constant 256 : index
    %c0_10 = arith.constant 0 : index
    %15 = vector.load %arg2[%c256, %c0_10] : memref<384x128xf32, #tpu.memory_space<vmem>>, vector<128x128xf32>
    %c2 = arith.constant 2 : index
    %c0_11 = arith.constant 0 : index
    %16 = vector.load %arg3[%c2, %c0_11] : memref<8x128xf32, #tpu.memory_space<vmem>>, vector<1x128xf32>
    %cst_12 = arith.constant dense<0.000000e+00> : vector<8x128xf32>
    %17 = tpu.matmul %14, %15, %cst_12 {dimension_numbers = #tpu.dot_dimension_numbers<[1], [0], [0], [1], [0, 0, 1, 1], [], []>} : vector<8x128xf32>, vector<128x128xf32>, vector<8x128xf32> -> vector<8x128xf32>
    %18 = vector.broadcast %16 : vector<1x128xf32> to vector<8x128xf32>
    %19 = arith.addf %17, %18 : vector<8x128xf32>
    %c0_13 = arith.constant 0 : index
    %c0_14 = arith.constant 0 : index
    %20 = vector.load %arg4[%c0_13, %c0_14] : memref<8x128xf32, #tpu.memory_space<vmem>>, vector<8x128xf32>
    tpu.vector_store %arg4[%c0_13, %c0_14], %19 {strides = array<i32>} : memref<8x128xf32, #tpu.memory_space<vmem>>, vector<8x128xf32>,
    return
  }
  func.func @transform_0(%arg0: i32) -> (i32, i32) {
    %c0_i32 = arith.constant 0 : i32
    %c0_i32_0 = arith.constant 0 : i32
    return %arg0, %c0_i32 : i32, i32
  }
  func.func @transform_1(%arg0: i32) -> (i32, i32) {
    %c0_i32 = arith.constant 0 : i32
    %c0_i32_0 = arith.constant 0 : i32
    %c0_i32_1 = arith.constant 0 : i32
    return %c0_i32, %c0_i32_0 : i32, i32
  }
  func.func @transform_2(%arg0: i32) -> (i32, i32) {
    %c0_i32 = arith.constant 0 : i32
    %c0_i32_0 = arith.constant 0 : i32
    %c0_i32_1 = arith.constant 0 : i32
    return %c0_i32, %c0_i32_0 : i32, i32
  }
  func.func @transform_3(%arg0: i32) -> (i32, i32) {
    %c0_i32 = arith.constant 0 : i32
    %c0_i32_0 = arith.constant 0 : i32
    return %arg0, %c0_i32 : i32, i32
  }
}

</mosaic_0001>

<bundles_post_ra>
// kernel: dnn_forward.1
= control target key start
LH: loop header
LB: loop body
LE: loop exit
PB: predicated region body
PF: predicated region fallthrough
CT: control target
= control target key end

     0   :  { %8 = vsyncpa [#allocation3], 0  ;;  %s185_s15 = smov [#allocation2]   ;;  %s186_s17 = smov 128   ;;  %s226_s0 = inlined_call_operand.vmem [shape: f32[8,128], index: 0, kind: input, shape index: {}]   ;;  %s227_s1 = inlined_call_operand.hbm [shape: f32[384,128], index: 1, kind: input, shape index: {}]   ;;  %s228_s2 = inlined_call_operand.vmem [shape: f32[8,128], index: 2, kind: input, shape index: {}]   ;;  %s229_s3 = inlined_call_operand.vmem [shape: f32[8,128], index: 3, kind: output, shape index: {}]  }
   0x1   :  { %s15_s14 = sshll.u32 %s227_s1, 4  ;;  %s17_s16 = sshll.u32 %s185_s15, 4  ;;  %s16_s14 = int_to_ptr.hbm [resolvable:$true] %s15_s14  ;;  %s18_s16 = int_to_ptr.vmem [resolvable:$true] %s17_s16 }
   0x2   :  { %s187_s18 = smov 8  }
   0x3   :  { %23 = dma.hbm_to_vmem [thread:$0]  %s16_s14, 6144, %s18_s16, [#allocation3], %s186_s17, %s186_s17, %s187_s18  }
   0x4   :  { %183 = dma.done.wait [#allocation3], 6144  }
   0x5   :  { %184 = vsyncadd [#allocation3], 4294961152  ;;  %v46_v0 = vld [vmem:[#allocation2 + $0x78] sm:$0xff]  ;;  %v45_v1 = vld [vmem:[#allocation2 + $0x70] sm:$0xff] }
   0x6   :  { %49 = vmatpush.msra.mxu0 %v46_v0  ;;  %v44_v2 = vld [vmem:[#allocation2 + $0x68] sm:$0xff]  ;;  %v43_v3 = vld [vmem:[#allocation2 + $0x60] sm:$0xff]  ;;  %v85_v4 = vld [vmem:[#allocation2 + $0xf8] sm:$0xff] }
   0x7   :  { %v42_v5 = vld [vmem:[#allocation2 + $0x58] sm:$0xff]  ;;  %88 = vmatpush.msra.mxu1 %v85_v4  ;;  %v84_v6 = vld [vmem:[#allocation2 + $0xf0] sm:$0xff]  ;;  %v83_v7 = vld [vmem:[#allocation2 + $0xe8] sm:$0xff] }
   0x8   :  { %50 = vmatpush.msra.mxu0 %v45_v1  ;;  %v41_v8 = vld [vmem:[#allocation2 + $0x50] sm:$0xff]  ;;  %v82_v9 = vld [vmem:[#allocation2 + $0xe0] sm:$0xff]  ;;  %v40_v10 = vld [vmem:[#allocation2 + $0x48] sm:$0xff] }
   0x9   :  { %89 = vmatpush.msra.mxu1 %v84_v6  ;;  %v81_v11 = vld [vmem:[#allocation2 + $0xd8] sm:$0xff]  ;;  %v39_v12 = vld [vmem:[#allocation2 + $0x40] sm:$0xff]  ;;  %v80_v13 = vld [vmem:[#allocation2 + $0xd0] sm:$0xff] }
   0xa   :  { %51 = vmatpush.msra.mxu0 %v44_v2  ;;  %v38_v14 = vld [vmem:[#allocation2 + $0x38] sm:$0xff]  ;;  %v79_v15 = vld [vmem:[#allocation2 + $0xc8] sm:$0xff]  ;;  %v37_v16 = vld [vmem:[#allocation2 + $0x30] sm:$0xff] }
   0xb   :  { %90 = vmatpush.msra.mxu1 %v83_v7  ;;  %v78_v17 = vld [vmem:[#allocation2 + $0xc0] sm:$0xff]  ;;  %v36_v18 = vld [vmem:[#allocation2 + $0x28] sm:$0xff]  ;;  %v77_v19 = vld [vmem:[#allocation2 + $0xb8] sm:$0xff] }
   0xc   :  { %52 = vmatpush.msra.mxu0 %v43_v3  ;;  %v35_v20 = vld [vmem:[#allocation2 + $0x20] sm:$0xff]  ;;  %v76_v21 = vld [vmem:[#allocation2 + $0xb0] sm:$0xff]  ;;  %v34_v22 = vld [vmem:[#allocation2 + $0x18] sm:$0xff] }
   0xd   :  { %91 = vmatpush.msra.mxu1 %v82_v9  ;;  %v75_v23 = vld [vmem:[#allocation2 + $0xa8] sm:$0xff]  ;;  %v33_v24 = vld [vmem:[#allocation2 + $0x10] sm:$0xff]  ;;  %v74_v25 = vld [vmem:[#allocation2 + $0xa0] sm:$0xff] }
   0xe   :  { %53 = vmatpush.msra.mxu0 %v42_v5  ;;  %v32_v26 = vld [vmem:[#allocation2 + $0x8] sm:$0xff]  ;;  %v73_v27 = vld [vmem:[#allocation2 + $0x98] sm:$0xff]  ;;  %v31_v28 = vld [vmem:[#allocation2] sm:$0xff] }
   0xf   :  { %92 = vmatpush.msra.mxu1 %v81_v11  ;;  %v30_v29 = vld [vmem:[%s226_s0] sm:$0xff]  ;;  %v72_v30 = vld [vmem:[#allocation2 + $0x90] sm:$0xff]  ;;  %v71_v31 = vld [vmem:[#allocation2 + $0x88] sm:$0xff] }
  0x10   :  { %54 = vmatpush.msra.mxu0 %v41_v8  ;;  %v70_v32 = vld [vmem:[#allocation2 + $0x80] sm:$0xff]  ;;  %v124_v33 = vld [vmem:[#allocation2 + $0x178] sm:$0xff]  ;;  %v123_v34 = vld [vmem:[#allocation2 + $0x170] sm:$0xff] }
  0x11   :  { %93 = vmatpush.msra.mxu1 %v80_v13  ;;  %127 = vmatpush.msra.mxu2 %v124_v33  ;;  %v122_v35 = vld [vmem:[#allocation2 + $0x168] sm:$0xff]  ;;  %v121_v36 = vld [vmem:[#allocation2 + $0x160] sm:$0xff]  ;;  %v120_v37 = vld [vmem:[#allocation2 + $0x158] sm:$0xff] }
  0x12   :  { %55 = vmatpush.msra.mxu0 %v40_v10  ;;  %v119_v38 = vld [vmem:[#allocation2 + $0x150] sm:$0xff]  ;;  %v118_v39 = vld [vmem:[#allocation2 + $0x148] sm:$0xff]  ;;  %v117_v40 = vld [vmem:[#allocation2 + $0x140] sm:$0xff] }
  0x13   :  { %94 = vmatpush.msra.mxu1 %v79_v15  ;;  %128 = vmatpush.msra.mxu2 %v123_v34  ;;  %v116_v41 = vld [vmem:[#allocation2 + $0x138] sm:$0xff]  ;;  %v115_v42 = vld [vmem:[#allocation2 + $0x130] sm:$0xff]  ;;  %v114_v43 = vld [vmem:[#allocation2 + $0x128] sm:$0xff] }
  0x14   :  { %56 = vmatpush.msra.mxu0 %v39_v12  ;;  %v113_v44 = vld [vmem:[#allocation2 + $0x120] sm:$0xff]  ;;  %v112_v45 = vld [vmem:[#allocation2 + $0x118] sm:$0xff]  ;;  %v111_v50 = vld [vmem:[#allocation2 + $0x110] sm:$0xff] }
  0x15   :  { %95 = vmatpush.msra.mxu1 %v78_v17  ;;  %129 = vmatpush.msra.mxu2 %v122_v35  ;;  %v156_v46 = vld [vmem:[%s228_s2] ss:$0 sm:$0xff]  ;;  %v110_v51 = vld [vmem:[#allocation2 + $0x108] sm:$0xff]  ;;  %v157_v53 = vld [vmem:[%s228_s2 + $0x1] ss:$0 sm:$0xff] }
  0x16   :  { %57 = vmatpush.msra.mxu0 %v38_v14  ;;  %v109_v52 = vld [vmem:[#allocation2 + $0x100] sm:$0xff] }
  0x17   :  { %96 = vmatpush.msra.mxu1 %v77_v19  ;;  %130 = vmatpush.msra.mxu2 %v121_v36  ;;  %v158_v57 = vld [vmem:[%s228_s2 + $0x2] ss:$0 sm:$0xff] }
  0x18   :  { %58 = vmatpush.msra.mxu0 %v37_v16 }
  0x19   :  { %97 = vmatpush.msra.mxu1 %v76_v21  ;;  %131 = vmatpush.msra.mxu2 %v120_v37 }
  0x1a   :  { %59 = vmatpush.msra.mxu0 %v36_v18 }
  0x1b   :  { %98 = vmatpush.msra.mxu1 %v75_v23  ;;  %132 = vmatpush.msra.mxu2 %v119_v38 }
  0x1c   :  { %60 = vmatpush.msra.mxu0 %v35_v20 }
  0x1d   :  { %99 = vmatpush.msra.mxu1 %v74_v25  ;;  %133 = vmatpush.msra.mxu2 %v118_v39 }
  0x1e   :  { %61 = vmatpush.msra.mxu0 %v34_v22 }
  0x1f   :  { %100 = vmatpush.msra.mxu1 %v73_v27  ;;  %134 = vmatpush.msra.mxu2 %v117_v40 }
  0x20   :  { %62 = vmatpush.msra.mxu0 %v33_v24 }
  0x21   :  { %101 = vmatpush.msra.mxu1 %v72_v30  ;;  %135 = vmatpush.msra.mxu2 %v116_v41 }
  0x22   :  { %63 = vmatpush.msra.mxu0 %v32_v26 }
  0x23   :  { %102 = vmatpush.msra.mxu1 %v71_v31  ;;  %136 = vmatpush.msra.mxu2 %v115_v42 }
  0x24   :  { %64 = vmatpush.msra.mxu0 %v31_v28 }
  0x25   :  { %65 = vmatmul.f32.vlgmr.msra.gmra.mxu0 %v30_v29  ;;  %103 = vmatpush.msra.mxu1 %v70_v32 }
  0x26   :  { %137 = vmatpush.msra.mxu2 %v114_v43 }
  0x28   :  { %138 = vmatpush.msra.mxu2 %v113_v44 }
  0x2a   :  { %139 = vmatpush.msra.mxu2 %v112_v45 }
  0x2c   :  { %140 = vmatpush.msra.mxu2 %v111_v50 }
  0x2e   :  { %141 = vmatpush.msra.mxu2 %v110_v51 }
  0x30   :  { %142 = vmatpush.msra.mxu2 %v109_v52 }
  0xa2   :  { %v66_v47 = vpop.f32.mrf.mxu0 }
  0xa3   :  { %v67_v48 = vadd.f32 %v156_v46, %v66_v47 }
  0xa5   :  { %v69_v49 = vmax.f32 %v67_v48, 0.0 }
  0xa7   :  { %104 = vmatmul.f32.vlgmr.msra.gmra.mxu1 %v69_v49 }
 0x124   :  { %v105_v54 = vpop.f32.mrf.mxu1 }
 0x125   :  { %v106_v55 = vadd.f32 %v157_v53, %v105_v54 }
 0x127   :  { %v108_v56 = vmax.f32 %v106_v55, 0.0 }
 0x129   :  { %143 = vmatmul.f32.vlgmr.msra.gmra.mxu2 %v108_v56 }
 0x1ac   :  { %v144_v58 = vpop.f32.mrf.mxu2 }
 0x1ad   :  { %v145_v59 = vadd.f32 %v158_v57, %v144_v58 }
 0x1af   :  { %147 = vst [vmem:[%s229_s3] sm:$0xff] %v145_v59 }
 0x1b0   :  { %152 = vsyncpa [#allocation3], 1 }

</bundles_post_ra>
